<compile_context>
chip_gen: v7x
topology: tpu7x:2x2x1
jax: 0.10.0
libtpu: 0.0.40
codegen_flags: <defaults>
</compile_context>

<pallas_src>
import jax
import jax.numpy as jnp
from jax.experimental import pallas as pl
from jax.experimental.pallas import tpu as pltpu

_SCALE = 1.0 / 255.0   # torch.div(x, 255.0) folded to a constant multiply
_TILE_HW = 512         # H*W rows per grid step (multiple of 8 and 128)


def _tt_features_kernel(x_ref, o_ref):
    # x_ref: (1, T, C)  one H*W tile of one batch element, channels minor (NHWC)
    # o_ref: (1, C, T)  same tile, channels major (NCHW), lane-dense last dim
    xt = jnp.transpose(x_ref[0], (1, 0))                 # (C, T) — XLU transpose
    o_ref[0] = (xt.astype(jnp.float32) * jnp.float32(_SCALE)).astype(o_ref.dtype)


def tt_features(x):
    """TTFeatures preprocessing: (N, H, W, C) -> (N, C, H, W) = permute(x/255)."""
    N, H, W, C = x.shape
    HW = H * W
    out_dtype = x.dtype if jnp.issubdtype(x.dtype, jnp.floating) else jnp.float32

    # Free folds only (channels stay minor) — no data movement on the host side.
    x3 = x.reshape(N, HW, C)

    # Tile the H*W axis. If the image is smaller than one tile, use the full
    # extent (full-extent blocks are exempt from the (8,128) divisibility rule).
    tile = _TILE_HW if HW >= _TILE_HW else HW
    n_tiles = pl.cdiv(HW, tile)

    in_bytes = x3.size * x3.dtype.itemsize
    out_bytes = N * C * HW * jnp.dtype(out_dtype).itemsize
    cost = pl.CostEstimate(
        flops=x3.size,                      # one multiply per element
        transcendentals=0,
        bytes_accessed=int(in_bytes + out_bytes),
    )

    out3 = pl.pallas_call(
        _tt_features_kernel,
        out_shape=jax.ShapeDtypeStruct((N, C, HW), out_dtype),
        grid=(N, n_tiles),
        in_specs=[pl.BlockSpec((1, tile, C), lambda n, i: (n, i, 0))],
        out_specs=pl.BlockSpec((1, C, tile), lambda n, i: (n, 0, i)),
        compiler_params=pltpu.CompilerParams(
            dimension_semantics=("parallel", "parallel")),
        cost_estimate=cost,
    )(x3)

    return out3.reshape(N, C, H, W)


if __name__ == "__main__":
    key = jax.random.PRNGKey(0)
    # NHWC pixel-valued input, as TTFeatures receives it (batch=2, 16x16, C=4).
    x = jax.random.uniform(key, (2, 16, 16, 4), dtype=jnp.float32,
                           minval=0.0, maxval=255.0)

    y = tt_features(x)
    y = jax.block_until_ready(y)

    assert y.shape == (2, 4, 16, 16), y.shape
    assert y.dtype == x.dtype, y.dtype

    ref = jnp.transpose(x / 255.0, (0, 3, 1, 2))
    err = float(jnp.max(jnp.abs(y - ref)))
    assert err < 1e-5, f"max abs error {err}"

    print("KERNEL_OK")
</pallas_src>

<mosaic_0001>
module attributes {stable_mosaic.version = 11 : i64} {
  func.func @_tt_features_kernel(%arg0: i32, %arg1: i32, %arg2: memref<1x256x4xf32, #tpu.memory_space<vmem>>, %arg3: memref<1x4x256xf32, #tpu.memory_space<vmem>>) attributes {dimension_semantics = [#tpu.dimension_semantics<parallel>, #tpu.dimension_semantics<parallel>], iteration_bounds = array<i64: 2, 1>, scalar_prefetch = 0 : i64, scratch_operands = 0 : i64, tpu.core_type = #tpu.core_type<tc>, window_params = [{transform_indices = @transform_0, window_bounds = array<i64: 1, 256, 4>}, {transform_indices = @transform_1, window_bounds = array<i64: 1, 4, 256>}]} {
    %c0 = arith.constant 0 : index
    %c0_0 = arith.constant 0 : index
    %c0_1 = arith.constant 0 : index
    %0 = vector.load %arg2[%c0, %c0_0, %c0_1] : memref<1x256x4xf32, #tpu.memory_space<vmem>>, vector<1x256x4xf32>
    %1 = vector.shape_cast %0 : vector<1x256x4xf32> to vector<256x4xf32>
    %2 = tpu.transpose %1, [1, 0] : vector<256x4xf32> -> vector<4x256xf32>
    %cst = arith.constant 0.00392156886 : f32
    %3 = vector.broadcast %cst : f32 to vector<4x256xf32>
    %4 = arith.mulf %2, %3 : vector<4x256xf32>
    %c0_2 = arith.constant 0 : index
    %c0_3 = arith.constant 0 : index
    %c0_4 = arith.constant 0 : index
    %5 = vector.load %arg3[%c0_2, %c0_3, %c0_4] : memref<1x4x256xf32, #tpu.memory_space<vmem>>, vector<1x4x256xf32>
    %6 = vector.shape_cast %5 : vector<1x4x256xf32> to vector<4x256xf32>
    %7 = vector.shape_cast %4 : vector<4x256xf32> to vector<1x4x256xf32>
    tpu.vector_store %arg3[%c0_2, %c0_3, %c0_4], %7 {strides = array<i32>} : memref<1x4x256xf32, #tpu.memory_space<vmem>>, vector<1x4x256xf32>,
    return
  }
  func.func @transform_0(%arg0: i32, %arg1: i32) -> (i32, i32, i32) {
    %c0_i32 = arith.constant 0 : i32
    %c0_i32_0 = arith.constant 0 : i32
    return %arg0, %arg1, %c0_i32 : i32, i32, i32
  }
  func.func @transform_1(%arg0: i32, %arg1: i32) -> (i32, i32, i32) {
    %c0_i32 = arith.constant 0 : i32
    %c0_i32_0 = arith.constant 0 : i32
    return %arg0, %c0_i32, %arg1 : i32, i32, i32
  }
}

</mosaic_0001>

<bundles_post_ra>
// kernel: tpu_custom_call.1
= control target key start
LH: loop header
LB: loop body
LE: loop exit
PB: predicated region body
PF: predicated region fallthrough
CT: control target
= control target key end

     0   :  { %6 = vsyncpa [#allocation3], 0  ;;  %s649_s0 = inlined_call_operand.vmem [shape: f32[2,256,4], index: 0, kind: input, shape index: {}]   ;;  %s650_s1 = inlined_call_operand.hbm [shape: f32[2,4,256], index: 1, kind: output, shape index: {}]  }
   0x1   :  { %8 = vsyncpa [#allocation3 + $0x1], 0  ;;  %s503_s6 = smov 0   ;;  %s505_s7 = smov 0  }
   0x2   :  { %s507_s8 = smov 0   ;;  %s509_s9 = smov 0  }
   0x3   :  { %s511_s10 = smov 0   ;;  %s513_s11 = smov 0  }
   0x4 LB: > { %s342_s12 = sadd.s32 4294967295, %s490_s11   ;;  %s343_s13 = sadd.s32 4294967294, %s490_s11   ;;  %s490_s11 = sphi %s513_s11, %s14_s11   ;;  %s486_s10 = sphi %s511_s10, %s657_s10   ;;  %s482_s9 = sphi %s509_s9, %s656_s9   ;;  %s478_s8 = sphi %s507_s8, %s655_s8   ;;  %s474_s7 = sphi %s505_s7, %s654_s7   ;;  %s470_s6 = sphi %s503_s6, %s653_s6  }
   0x5   : > { %s26_s14 = sadd.s32 1, %s486_s10  ;;  %s63_s15 = sadd.s32 1, %s478_s8 }
   0x6   : > { %p28_p0 = scmp.ge.s32.totalorder %s26_s14, 2  ;;  %p73_p1 = scmp.ne.s32.totalorder %s478_s8, %s474_s7 }
   0x7   : > { %p74_p2 = scmp.eq.s32.totalorder %s342_s12, 1  ;;  %p79_p3 = scmp.ne.s32.totalorder %s474_s7, %s470_s6 }
   0x8   : > { %s659_s14 = smov (%p28_p0, %s26_s14), 0  ;;  %p80_p5 = scmp.eq.s32.totalorder %s343_s13, 1 }
   0x9   : > { %p543_p4 = por %p74_p2, %p73_p1  ;;  %s58_s17 = ssub.s32 %s486_s10, %s659_s14 }
   0xa   : > { %p346_p6 = scmp.ge.s32.totalorder %s490_s11, 1  ;;  %p61_p7 = scmp.eq.s32.totalorder %s58_s17, 0 }
   0xb   : > { %p550_p8 = por %p80_p5, %p79_p3  ;;  %p111_p9 = scmp.lt.s32.totalorder %s490_s11, 3 }
   0xc   : > { %s556_s19 = scalar_select %p61_p7, %s478_s8, %s63_s15  }
   0xd   : > { %p112_p10 = pnand %p346_p6, %p111_p9 }
   0xe   : > { %p136_p11 = scmp.lt.s32.totalorder (!%p112_p10), %s482_s9, 1  ;;  %s132_s25 = sand.u32 (!%p112_p10), 1, %s474_s7  }
   0xf   : > { %115 = sbr.rel (%p112_p10) target bundleno = 175 (0xaf), region = 24  ;;  %s347_s26 = sshll.u32 (!%p112_p10), %s132_s25, 3 }
  0x10   : > { %s356_s27 = sshll.u32 (!%p112_p10), %s482_s9, 7  ;;  %s134_s28 = scalar_lea.vmem (!%p112_p10), [#allocation2], %s347_s26 }
  0x11   : > { %s266_s29 = sshll.u32 (!%p112_p10), %s134_s28, 4  ;;  %s602_s3 = scalar_lea.hbm (!%p112_p10), %s650_s1, %s356_s27  ;;  %s604_s29 = int_to_ptr.vmem [resolvable:$true] %s266_s29 }
  0x12   : > { %s250_s4 = scalar_lea.sflag (!%p112_p10), [#allocation3], %s132_s25  ;;  %s412_s5 = scalar_lea.vmem (!%p112_p10), %s604_s29, 128 }
  0x13   : > { %p413_p12 = scmp.ne.s32.totalorder (!%p112_p10), %s604_s29, %s412_s5 }
  0x15   : > { %p414_p13 = pnand (!%p112_p10), %p413_p12, %p543_p4 }
  0x16   : > { %s137_s20 = scalar_select %p136_p11, %s482_s9, 1 }
  0x17   : > { %p415_p0 = pneg %p414_p13  ;;  %s492_s9 = smov [#allocation2]  }
  0x18   : > { %s355_s21 = sshll.u32 %s137_s20, 8  ;;  %s416_s12 = sshll.u32 %s492_s9, 4  ;;  %s417_s12 = int_to_ptr.vmem [resolvable:$false] %s416_s12 }
  0x19   : > { %s563_s24 = scalar_lea.vmem %s649_s0, %s355_s21  ;;  %s418_s13 = scalar_lea.vmem %s417_s12, 256 }
  0x1a   : > { %v162_v0 = vld [vmem:[%s563_s24 + $0x80] sm:$0xff]  ;;  %v163_v2 = vld [vmem:[%s563_s24 + $0x88] sm:$0xff]  ;;  %v164_v4 = vld [vmem:[%s563_s24 + $0x90] sm:$0xff]  ;;  %p419_p1 = scmp.lt.s32.totalorder %s604_s29, %s417_s12  ;;  %p420_p2 = scmp.lt.s32.totalorder %s418_s13, %s412_s5 }
  0x1b   : > { %v146_v1 = vld [vmem:[%s563_s24] sm:$0xff]  ;;  %210 = vxpose.xlu1.b32.start [1/16] (narrow) %v162_v0, 8  ;;  %v147_v3 = vld [vmem:[%s563_s24 + $0x8] sm:$0xff]  ;;  %v148_v5 = vld [vmem:[%s563_s24 + $0x10] sm:$0xff] }
  0x1c   : > { %178 = vxpose.xlu0.b32.start [1/16] (narrow) %v146_v1, 8  ;;  %v165_v6 = vld [vmem:[%s563_s24 + $0x98] sm:$0xff]  ;;  %v166_v8 = vld [vmem:[%s563_s24 + $0xa0] sm:$0xff]  ;;  %v167_v10 = vld [vmem:[%s563_s24 + $0xa8] sm:$0xff]  ;;  %p421_p3 = por %p420_p2, %p419_p1 }
  0x1d   : > { %v149_v7 = vld [vmem:[%s563_s24 + $0x18] sm:$0xff]  ;;  %v150_v9 = vld [vmem:[%s563_s24 + $0x20] sm:$0xff]  ;;  %v151_v11 = vld [vmem:[%s563_s24 + $0x28] sm:$0xff] }
  0x1e   : > { %v168_v12 = vld [vmem:[%s563_s24 + $0xb0] sm:$0xff]  ;;  %v169_v14 = vld [vmem:[%s563_s24 + $0xb8] sm:$0xff]  ;;  %v170_v16 = vld [vmem:[%s563_s24 + $0xc0] sm:$0xff]  ;;  %p422_p5 = pnand %p421_p3, %p415_p0 }
  0x1f   : > { %211 = vxpose.xlu1.b32.cont [2/16] (narrow) %v163_v2, 8  ;;  %v152_v13 = vld [vmem:[%s563_s24 + $0x30] sm:$0xff]  ;;  %v153_v15 = vld [vmem:[%s563_s24 + $0x38] sm:$0xff]  ;;  %v154_v17 = vld [vmem:[%s563_s24 + $0x40] sm:$0xff] }
  0x20   : > { %179 = vxpose.xlu0.b32.cont [2/16] (narrow) %v147_v3, 8  ;;  %v171_v18 = vld [vmem:[%s563_s24 + $0xc8] sm:$0xff]  ;;  %v172_v20 = vld [vmem:[%s563_s24 + $0xd0] sm:$0xff]  ;;  %v173_v22 = vld [vmem:[%s563_s24 + $0xd8] sm:$0xff] }
  0x21   : > { %v155_v19 = vld [vmem:[%s563_s24 + $0x48] sm:$0xff]  ;;  %v156_v21 = vld [vmem:[%s563_s24 + $0x50] sm:$0xff]  ;;  %v157_v23 = vld [vmem:[%s563_s24 + $0x58] sm:$0xff] }
  0x22   : > { %v174_v24 = vld [vmem:[%s563_s24 + $0xe0] sm:$0xff]  ;;  %v175_v26 = vld [vmem:[%s563_s24 + $0xe8] sm:$0xff]  ;;  %v176_v28 = vld [vmem:[%s563_s24 + $0xf0] sm:$0xff] }
  0x23   : > { %212 = vxpose.xlu1.b32.cont [3/16] (narrow) %v164_v4, 8  ;;  %v158_v25 = vld [vmem:[%s563_s24 + $0x60] sm:$0xff]  ;;  %v159_v27 = vld [vmem:[%s563_s24 + $0x68] sm:$0xff]  ;;  %v160_v29 = vld [vmem:[%s563_s24 + $0x70] sm:$0xff] }
  0x24   : > { %180 = vxpose.xlu0.b32.cont [3/16] (narrow) %v148_v5, 8  ;;  %v177_v30 = vld [vmem:[%s563_s24 + $0xf8] sm:$0xff] }
  0x25   : > { %v161_v31 = vld [vmem:[%s563_s24 + $0x78] sm:$0xff] }
  0x27   : > { %213 = vxpose.xlu1.b32.cont [4/16] (narrow) %v165_v6, 8 }
  0x28   : > { %181 = vxpose.xlu0.b32.cont [4/16] (narrow) %v149_v7, 8 }
  0x2b   : > { %214 = vxpose.xlu1.b32.cont [5/16] (narrow) %v166_v8, 8 }
  0x2c   : > { %182 = vxpose.xlu0.b32.cont [5/16] (narrow) %v150_v9, 8 }
  0x2f   : > { %215 = vxpose.xlu1.b32.cont [6/16] (narrow) %v167_v10, 8 }
  0x30   : > { %183 = vxpose.xlu0.b32.cont [6/16] (narrow) %v151_v11, 8 }
  0x33   : > { %216 = vxpose.xlu1.b32.cont [7/16] (narrow) %v168_v12, 8 }
  0x34   : > { %184 = vxpose.xlu0.b32.cont [7/16] (narrow) %v152_v13, 8 }
  0x37   : > { %217 = vxpose.xlu1.b32.cont [8/16] (narrow) %v169_v14, 8 }
  0x38   : > { %185 = vxpose.xlu0.b32.cont [8/16] (narrow) %v153_v15, 8 }
  0x3b   : > { %218 = vxpose.xlu1.b32.cont [9/16] (narrow) %v170_v16, 8 }
  0x3c   : > { %186 = vxpose.xlu0.b32.cont [9/16] (narrow) %v154_v17, 8 }
  0x3f   : > { %219 = vxpose.xlu1.b32.cont [10/16] (narrow) %v171_v18, 8 }
  0x40   : > { %187 = vxpose.xlu0.b32.cont [10/16] (narrow) %v155_v19, 8 }
  0x43   : > { %220 = vxpose.xlu1.b32.cont [11/16] (narrow) %v172_v20, 8 }
  0x44   : > { %188 = vxpose.xlu0.b32.cont [11/16] (narrow) %v156_v21, 8 }
  0x47   : > { %221 = vxpose.xlu1.b32.cont [12/16] (narrow) %v173_v22, 8 }
  0x48   : > { %189 = vxpose.xlu0.b32.cont [12/16] (narrow) %v157_v23, 8 }
  0x4b   : > { %222 = vxpose.xlu1.b32.cont [13/16] (narrow) %v174_v24, 8 }
  0x4c   : > { %190 = vxpose.xlu0.b32.cont [13/16] (narrow) %v158_v25, 8 }
  0x4f   : > { %223 = vxpose.xlu1.b32.cont [14/16] (narrow) %v175_v26, 8 }
  0x50   : > { %191 = vxpose.xlu0.b32.cont [14/16] (narrow) %v159_v27, 8 }
  0x53   : > { %224 = vxpose.xlu1.b32.cont [15/16] (narrow) %v176_v28, 8 }
  0x54   : > { %192 = vxpose.xlu0.b32.cont [15/16] (narrow) %v160_v29, 8 }
  0x57   : > { %225 = vxpose.xlu1.b32.end [16/16] (narrow) %v177_v30, 8 }
  0x58   : > { %193 = vxpose.xlu0.b32.end [16/16] (narrow) %v161_v31, 8 }
  0x9b   : > { %v226_v32 = vpop.trf.xlu1 }
  0x9c   : > { %v194_v33 = vpop.trf.xlu0  ;;  %v243_v34 = vmul.f32 0.003921569, %v226_v32 }
  0x9d   : > { %v242_v35 = vmul.f32 0.003921569, %v194_v33 }
  0x9f   : > { %v246_v36 = vcombine.low %v242_v35, %v243_v34 }
  0xa1   : > { %248 = vst [vmem:[%s134_s28] sm:$0xff] %v246_v36 }
  0xa2   : > { %425 = shalt.err (!%p422_p5)
}
  0xa3   : > { %s426_s15 = scalar_lea.hbm %s602_s3, 128  ;;  %s430_s21 = scalar_lea.hbm %s650_s1, 256 }
  0xa4   : > { %p427_p6 = scmp.ne.s32.totalorder %s602_s3, %s426_s15  ;;  %p431_p10 = scmp.lt.u32.totalorder %s602_s3, %s650_s1 }
  0xa5   : > { %p432_p11 = scmp.lt.u32.totalorder %s430_s21, %s426_s15  ;;  %p434_p13 = scmp.lt.u32.totalorder %s426_s15, %s602_s3 }
  0xa6   : > { %p428_p7 = pnand %p427_p6, %p543_p4 }
  0xa7   : > { %p433_p12 = por %p432_p11, %p431_p10 }
  0xa8   : > { %p429_p9 = pneg %p428_p7 }
  0xa9   : > { %p435_p0 = por %p434_p13, %p433_p12 }
  0xab   : > { %p436_p1 = pnand %p435_p0, %p429_p9 }
  0xad   : > { %439 = shalt.err (!%p436_p1)
}
  0xae   : > { %357 = dma.vmem_to_hbm [thread:$0]  (%p543_p4), %s604_s29, 128, %s602_s3, %s250_s4  }
  0xaf PF: > { %p363_p2 = scmp.ge.s32.totalorder %s490_s11, 2  ;;  %s278_s24 = sand.u32 1, %s470_s6  }
  0xb0   : > { %s279_s25 = scalar_lea.sflag [#allocation3], %s278_s24 }
  0xb1   : > { %p360_p3 = pnand %p363_p2, %p550_p8 }
  0xb3   : > { %465 = dma.done.wait (!%p360_p3), %s279_s25, 128  }
  0xb4   : > { %467 = vsyncadd (!%p360_p3), %s279_s25, 4294967168  ;;  %s14_s11 = sadd.s32 1, %s490_s11   ;;  %s653_s6 = smov %s474_s7 }
  0xb5   : > { %p11_p5 = scmp.ge.s32.totalorder %s14_s11, 4   ;;  %s654_s7 = smov %s478_s8 }
  0xb6   : > { %s655_s8 = smov %s556_s19  ;;  %s656_s9 = smov %s486_s10 }
  0xb7   : > { %s657_s10 = smov %s659_s14  ;;  %13 = sbr.rel (!%p11_p5) target bundleno = 4 (0x4), region = 59 }
  0xbe   :  { %284 = vsyncpa [#allocation3], 1 }
  0xbf   :  { %286 = vsyncpa [#allocation3 + $0x1], 1 }

</bundles_post_ra>
